<compile_context>
chip_gen: v7x
topology: tpu7x:2x2x1
jax: 0.10.0
libtpu: 0.0.40
codegen_flags: <defaults>
</compile_context>

<pallas_src>
import functools

import jax
import jax.numpy as jnp
from jax.experimental import pallas as pl
from jax.experimental.pallas import tpu as pltpu


# ----------------------------- hardware budgets --------------------------------

def _detect_vmem_limit():
    cap = None
    try:
        info = pltpu.get_tpu_info()
        cap = getattr(info, "vmem_capacity_bytes", None)
    except Exception:
        cap = None
    if not cap:
        cap = 64 * 1024 * 1024            # conservative default: v7x per-TC VMEM
    # Leave ~25% headroom for compiler-internal scratch; never exceed 96 MiB.
    return int(min((cap * 3) // 4, 96 * 1024 * 1024))


_VMEM_LIMIT_BYTES = _detect_vmem_limit()
# Working-set budget for the fused single-pass kernels. The per-channel byte
# estimate already counts double-buffered native in/out blocks plus f32 temps.
_FUSED_BUDGET_BYTES = int(_VMEM_LIMIT_BYTES * 0.7)

_LANE_TILE = 4096                         # lane-axis streaming tile (128-multiple)
_SUBLANE_TILE = 256                       # sublane-axis streaming tile (8-multiple)


def _cparams(dim_sem):
    return pltpu.CompilerParams(dimension_semantics=dim_sem,
                                vmem_limit_bytes=_VMEM_LIMIT_BYTES)


def _cost(bytes_accessed, flops, transcendentals=0):
    return pl.CostEstimate(flops=int(flops),
                           transcendentals=int(transcendentals),
                           bytes_accessed=int(bytes_accessed))


def _ceil_to(v, m):
    return -(-v // m) * m


def _sublane_pack(dtype):
    # sublane packing of the dtype: f32 -> 8, bf16 -> 16, int8/fp8 -> 32
    return max(8, 32 // jnp.dtype(dtype).itemsize)


def _sublane_channel_tile(C, pack, max_tile=_SUBLANE_TILE):
    """Channel tile on the sublane axis: full extent when small, otherwise a
    pack-aligned tile capped at max_tile and at ceil(C/2) (>=2 blocks so v7x's
    second TensorCore gets work)."""
    if C <= max(pack, 8):
        return C
    t = min(max_tile, _ceil_to(-(-C // 2), pack))
    return int(min(max(t, pack), C))


def _lane_channel_tile(C, max_tile=_LANE_TILE):
    """Channel tile on the lane axis (2D inputs): full extent when <=128, else a
    128-multiple capped at max_tile and at ceil(C/2)."""
    if C <= 128:
        return C
    t = min(max_tile, _ceil_to(-(-C // 2), 128))
    return int(min(max(t, 128), C))


def _stream_tile(dim, max_tile):
    """Streaming tile for a reduction / elementwise axis: full extent when it
    fits, else the (pre-aligned) max tile; partial edge blocks are allowed."""
    return dim if dim <= max_tile else max_tile


def _fused4d_c_tile(B, C, HW, dtype):
    """Channel tile for the fused 4D kernel, or None if a block can't fit."""
    itemsize = jnp.dtype(dtype).itemsize
    pack = _sublane_pack(dtype)
    # per-channel working set: dbl-buffered native in + out blocks + f32 temps.
    per_channel = B * HW * (4 * itemsize + 8)
    max_fit = _FUSED_BUDGET_BYTES // per_channel
    if max_fit < 1:
        return None
    if max_fit >= C:
        c_tile = C
    else:
        c_tile = int((max_fit // pack) * pack)
        if c_tile < pack:
            return None
    if C >= 2 * pack:                     # keep >=2 channel blocks (v7x dual TC)
        c_tile = min(c_tile, _ceil_to(-(-C // 2), pack))
    return int(min(c_tile, C))


def _fused2d_c_tile(N, C, dtype):
    """Channel tile for the fused 2D kernel, or None if a block can't fit."""
    itemsize = jnp.dtype(dtype).itemsize
    per_col = N * (4 * itemsize + 8)
    max_fit = _FUSED_BUDGET_BYTES // per_col
    if max_fit >= C:
        c_tile = C
    elif max_fit >= 128:
        c_tile = int((max_fit // 128) * 128)
    else:
        return None
    if C >= 256:                          # keep >=2 channel blocks when splittable
        c_tile = min(c_tile, _ceil_to(-(-C // 2), 128))
    return int(min(c_tile, C))


# --------------------- 4D (NCHW) kernels: channels on sublanes ----------------

def _fused4d_kernel(x_ref, w_ref, b_ref, o_ref, mean_ref, var_ref, *, eps, inv_count):
    # x_ref: (B, c_tile, HW) native dtype ; w/b: (c_tile, 1) f32
    x = x_ref[...].astype(jnp.float32)
    s = jnp.sum(jnp.sum(x, axis=2, keepdims=True), axis=0)       # (c_tile, 1)
    sq = jnp.sum(jnp.sum(x * x, axis=2, keepdims=True), axis=0)  # (c_tile, 1)
    mean = s * inv_count
    var = jnp.maximum(sq * inv_count - mean * mean, 0.0)         # E[x^2] - mean^2
    a = w_ref[...] * jax.lax.rsqrt(var + eps)                    # folded affine
    c = b_ref[...] - mean * a
    o_ref[...] = (x * a + c).astype(o_ref.dtype)
    mean_ref[...] = mean
    var_ref[...] = var


def _stats4d_kernel(x_ref, sum_ref, sq_ref, *, hw, hw_tile):
    # x_ref: (c_tile, hw_tile); accumulate per-channel sum / sum(x^2) across the
    # (batch, hw-tile) reduction grid axes; outputs are resident accumulators.
    bi = pl.program_id(1)
    hi = pl.program_id(2)

    @pl.when(jnp.logical_and(bi == 0, hi == 0))
    def _():
        sum_ref[...] = jnp.zeros_like(sum_ref)
        sq_ref[...] = jnp.zeros_like(sq_ref)

    x = x_ref[...].astype(jnp.float32)

    def _accum(xv):
        sum_ref[...] += jnp.sum(xv, axis=1, keepdims=True)
        sq_ref[...] += jnp.sum(xv * xv, axis=1, keepdims=True)

    if hw % hw_tile != 0:
        # Only the LAST reduction tile carries lane padding -> gate the mask.
        last = pl.num_programs(2) - 1

        @pl.when(hi == last)
        def _():
            lane = jax.lax.broadcasted_iota(jnp.int32, x.shape, 1) + hi * hw_tile
            _accum(jnp.where(lane < hw, x, 0.0))

        @pl.when(hi != last)
        def _():
            _accum(x)
    else:
        _accum(x)


def _affine4d_kernel(x_ref, a_ref, c_ref, o_ref):
    # out = x * a + c ; a, c per-channel with shape (c_tile, 1)
    o_ref[...] = (x_ref[...].astype(jnp.float32) * a_ref[...]
                  + c_ref[...]).astype(o_ref.dtype)


# --------------------- 2D (N, C) kernels: channels on lanes -------------------

def _fused2d_kernel(x_ref, w_ref, b_ref, o_ref, mean_ref, var_ref, *, eps, inv_count):
    # x_ref: (N, c_tile) native dtype ; w/b: (1, c_tile) f32
    x = x_ref[...].astype(jnp.float32)
    s = jnp.sum(x, axis=0, keepdims=True)                        # (1, c_tile)
    sq = jnp.sum(x * x, axis=0, keepdims=True)
    mean = s * inv_count
    var = jnp.maximum(sq * inv_count - mean * mean, 0.0)
    a = w_ref[...] * jax.lax.rsqrt(var + eps)
    c = b_ref[...] - mean * a
    o_ref[...] = (x * a + c).astype(o_ref.dtype)
    mean_ref[...] = mean
    var_ref[...] = var


def _stats2d_kernel(x_ref, sum_ref, sq_ref, *, n, n_tile):
    ni = pl.program_id(1)

    @pl.when(ni == 0)
    def _():
        sum_ref[...] = jnp.zeros_like(sum_ref)
        sq_ref[...] = jnp.zeros_like(sq_ref)

    x = x_ref[...].astype(jnp.float32)   # (n_tile, c_tile)

    def _accum(xv):
        sum_ref[...] += jnp.sum(xv, axis=0, keepdims=True)
        sq_ref[...] += jnp.sum(xv * xv, axis=0, keepdims=True)

    if n % n_tile != 0:
        last = pl.num_programs(1) - 1

        @pl.when(ni == last)
        def _():
            row = jax.lax.broadcasted_iota(jnp.int32, x.shape, 0) + ni * n_tile
            _accum(jnp.where(row < n, x, 0.0))

        @pl.when(ni != last)
        def _():
            _accum(x)
    else:
        _accum(x)


def _affine2d_kernel(x_ref, a_ref, c_ref, o_ref):
    # out = x * a + c ; a, c per-channel with shape (1, c_tile) (lane-dense)
    o_ref[...] = (x_ref[...].astype(jnp.float32) * a_ref[...]
                  + c_ref[...]).astype(o_ref.dtype)


# ------------------------------- 4D wrappers -----------------------------------

def _apply_affine_4d(x, a_c1, c_c1):
    """out = x * a[channel] + c[channel]; x is NCHW, a/c are (C, 1) f32."""
    B, C, H, W = x.shape
    HW = H * W
    xr = x.reshape(B, C, HW)             # contiguous -> free reshape, no transpose
    pack = _sublane_pack(x.dtype)
    c_tile = _sublane_channel_tile(C, pack)
    hw_tile = _stream_tile(HW, _LANE_TILE)
    grid = (pl.cdiv(C, c_tile), B, pl.cdiv(HW, hw_tile))
    nbytes = x.size * jnp.dtype(x.dtype).itemsize
    out = pl.pallas_call(
        _affine4d_kernel,
        grid=grid,
        in_specs=[
            pl.BlockSpec((None, c_tile, hw_tile), lambda ci, bi, hi: (bi, ci, hi)),
            pl.BlockSpec((c_tile, 1), lambda ci, bi, hi: (ci, 0)),
            pl.BlockSpec((c_tile, 1), lambda ci, bi, hi: (ci, 0)),
        ],
        out_specs=pl.BlockSpec((None, c_tile, hw_tile), lambda ci, bi, hi: (bi, ci, hi)),
        out_shape=jax.ShapeDtypeStruct((B, C, HW), x.dtype),
        compiler_params=_cparams(("parallel", "parallel", "parallel")),
        cost_estimate=_cost(bytes_accessed=2 * nbytes + 8 * C, flops=2 * x.size),
    )(xr, a_c1, c_c1)
    return out.reshape(B, C, H, W)


def _bn_train_4d_fused(x, weight, bias, eps, c_tile):
    B, C, H, W = x.shape
    HW = H * W
    xr = x.reshape(B, C, HW)
    w = weight.reshape(C, 1).astype(jnp.float32)
    b = bias.reshape(C, 1).astype(jnp.float32)
    nbytes = x.size * jnp.dtype(x.dtype).itemsize
    out, mean, var = pl.pallas_call(
        functools.partial(_fused4d_kernel, eps=eps, inv_count=1.0 / (B * HW)),
        grid=(pl.cdiv(C, c_tile),),
        in_specs=[
            pl.BlockSpec((B, c_tile, HW), lambda ci: (0, ci, 0)),
            pl.BlockSpec((c_tile, 1), lambda ci: (ci, 0)),
            pl.BlockSpec((c_tile, 1), lambda ci: (ci, 0)),
        ],
        out_specs=(
            pl.BlockSpec((B, c_tile, HW), lambda ci: (0, ci, 0)),
            pl.BlockSpec((c_tile, 1), lambda ci: (ci, 0)),
            pl.BlockSpec((c_tile, 1), lambda ci: (ci, 0)),
        ),
        out_shape=(
            jax.ShapeDtypeStruct((B, C, HW), x.dtype),
            jax.ShapeDtypeStruct((C, 1), jnp.float32),
            jax.ShapeDtypeStruct((C, 1), jnp.float32),
        ),
        compiler_params=_cparams(("parallel",)),
        cost_estimate=_cost(bytes_accessed=2 * nbytes + 24 * C,
                            flops=7 * x.size, transcendentals=C),
    )(xr, w, b)
    return out.reshape(B, C, H, W), mean[:, 0], var[:, 0]


def _bn_train_4d_two_pass(x, weight, bias, eps):
    B, C, H, W = x.shape
    HW = H * W
    xr = x.reshape(B, C, HW)
    pack = _sublane_pack(x.dtype)
    c_tile = _sublane_channel_tile(C, pack)
    hw_tile = _stream_tile(HW, _LANE_TILE)
    grid = (pl.cdiv(C, c_tile), B, pl.cdiv(HW, hw_tile))
    nbytes = x.size * jnp.dtype(x.dtype).itemsize
    sums, sqs = pl.pallas_call(
        functools.partial(_stats4d_kernel, hw=HW, hw_tile=hw_tile),
        grid=grid,
        in_specs=[pl.BlockSpec((None, c_tile, hw_tile), lambda ci, bi, hi: (bi, ci, hi))],
        out_specs=(
            pl.BlockSpec((c_tile, 1), lambda ci, bi, hi: (ci, 0)),
            pl.BlockSpec((c_tile, 1), lambda ci, bi, hi: (ci, 0)),
        ),
        out_shape=(
            jax.ShapeDtypeStruct((C, 1), jnp.float32),
            jax.ShapeDtypeStruct((C, 1), jnp.float32),
        ),
        compiler_params=_cparams(("parallel", "arbitrary", "arbitrary")),
        cost_estimate=_cost(bytes_accessed=nbytes + 8 * C, flops=3 * x.size),
    )(xr)
    count = B * HW
    mean = sums[:, 0] / count
    var = jnp.maximum(sqs[:, 0] / count - mean * mean, 0.0)
    a = weight.astype(jnp.float32) * jax.lax.rsqrt(var + eps)   # fold affine
    c = bias.astype(jnp.float32) - mean * a
    out = _apply_affine_4d(x, a.reshape(C, 1), c.reshape(C, 1))
    return out, mean, var


def _bn_train_4d(x, weight, bias, eps):
    B, C, H, W = x.shape
    c_tile = _fused4d_c_tile(B, C, H * W, x.dtype)
    if c_tile is not None:
        return _bn_train_4d_fused(x, weight, bias, eps, c_tile)
    return _bn_train_4d_two_pass(x, weight, bias, eps)


# ------------------------------- 2D wrappers -----------------------------------

def _apply_affine_2d(x, a_1c, c_1c):
    N, C = x.shape
    n_tile = _stream_tile(N, _SUBLANE_TILE)
    c_tile = _lane_channel_tile(C)
    nbytes = x.size * jnp.dtype(x.dtype).itemsize
    return pl.pallas_call(
        _affine2d_kernel,
        grid=(pl.cdiv(N, n_tile), pl.cdiv(C, c_tile)),
        in_specs=[
            pl.BlockSpec((n_tile, c_tile), lambda ni, ci: (ni, ci)),
            pl.BlockSpec((1, c_tile), lambda ni, ci: (0, ci)),
            pl.BlockSpec((1, c_tile), lambda ni, ci: (0, ci)),
        ],
        out_specs=pl.BlockSpec((n_tile, c_tile), lambda ni, ci: (ni, ci)),
        out_shape=jax.ShapeDtypeStruct((N, C), x.dtype),
        compiler_params=_cparams(("parallel", "parallel")),
        cost_estimate=_cost(bytes_accessed=2 * nbytes + 8 * C, flops=2 * x.size),
    )(x, a_1c, c_1c)


def _bn_train_2d_fused(x, weight, bias, eps, c_tile):
    N, C = x.shape
    w = weight.reshape(1, C).astype(jnp.float32)
    b = bias.reshape(1, C).astype(jnp.float32)
    nbytes = x.size * jnp.dtype(x.dtype).itemsize
    out, mean, var = pl.pallas_call(
        functools.partial(_fused2d_kernel, eps=eps, inv_count=1.0 / N),
        grid=(pl.cdiv(C, c_tile),),
        in_specs=[
            pl.BlockSpec((N, c_tile), lambda ci: (0, ci)),
            pl.BlockSpec((1, c_tile), lambda ci: (0, ci)),
            pl.BlockSpec((1, c_tile), lambda ci: (0, ci)),
        ],
        out_specs=(
            pl.BlockSpec((N, c_tile), lambda ci: (0, ci)),
            pl.BlockSpec((1, c_tile), lambda ci: (0, ci)),
            pl.BlockSpec((1, c_tile), lambda ci: (0, ci)),
        ),
        out_shape=(
            jax.ShapeDtypeStruct((N, C), x.dtype),
            jax.ShapeDtypeStruct((1, C), jnp.float32),
            jax.ShapeDtypeStruct((1, C), jnp.float32),
        ),
        compiler_params=_cparams(("parallel",)),
        cost_estimate=_cost(bytes_accessed=2 * nbytes + 24 * C,
                            flops=7 * x.size, transcendentals=C),
    )(x, w, b)
    return out, mean[0], var[0]


def _bn_train_2d_two_pass(x, weight, bias, eps):
    N, C = x.shape
    n_tile = _stream_tile(N, _SUBLANE_TILE)
    c_tile = _lane_channel_tile(C)
    nbytes = x.size * jnp.dtype(x.dtype).itemsize
    sums, sqs = pl.pallas_call(
        functools.partial(_stats2d_kernel, n=N, n_tile=n_tile),
        grid=(pl.cdiv(C, c_tile), pl.cdiv(N, n_tile)),
        in_specs=[pl.BlockSpec((n_tile, c_tile), lambda ci, ni: (ni, ci))],
        out_specs=(
            pl.BlockSpec((1, c_tile), lambda ci, ni: (0, ci)),
            pl.BlockSpec((1, c_tile), lambda ci, ni: (0, ci)),
        ),
        out_shape=(
            jax.ShapeDtypeStruct((1, C), jnp.float32),
            jax.ShapeDtypeStruct((1, C), jnp.float32),
        ),
        compiler_params=_cparams(("parallel", "arbitrary")),
        cost_estimate=_cost(bytes_accessed=nbytes + 8 * C, flops=3 * x.size),
    )(x)
    mean = sums[0] / N
    var = jnp.maximum(sqs[0] / N - mean * mean, 0.0)
    a = weight.astype(jnp.float32) * jax.lax.rsqrt(var + eps)
    c = bias.astype(jnp.float32) - mean * a
    out = _apply_affine_2d(x, a.reshape(1, C), c.reshape(1, C))
    return out, mean, var


def _bn_train_2d(x, weight, bias, eps):
    N, C = x.shape
    c_tile = _fused2d_c_tile(N, C, x.dtype)
    if c_tile is not None:
        return _bn_train_2d_fused(x, weight, bias, eps, c_tile)
    return _bn_train_2d_two_pass(x, weight, bias, eps)


# --------------------------------- module --------------------------------------

class BatchNormPallas:
    """JAX/Pallas re-implementation of the provided PyTorch `Batch_norm` module."""

    def __init__(self, num_features, eps=1e-05, momentum=0.1, training=True, key=None):
        if key is None:
            key = jax.random.PRNGKey(0)
        self.num_features = num_features
        self.eps = eps
        self.momentum = momentum
        self.training = training
        # init.uniform_(weight) -> U[0, 1); init.zeros_(bias)
        self.weight = jax.random.uniform(key, (num_features,), dtype=jnp.float32)
        self.bias = jnp.zeros((num_features,), dtype=jnp.float32)
        self.running_mean = jnp.zeros((num_features,), dtype=jnp.float32)
        self.running_var = jnp.ones((num_features,), dtype=jnp.float32)

    def __call__(self, X):
        assert X.ndim in (2, 4)
        if self.training:
            if X.ndim == 4:
                out, mean, var = _bn_train_4d(X, self.weight, self.bias, self.eps)
            else:
                out, mean, var = _bn_train_2d(X, self.weight, self.bias, self.eps)
            # NOTE: matches the reference module exactly:
            #   running*momentum + batch*(1-momentum), biased variance.
            self.running_mean = (self.running_mean * self.momentum
                                 + mean * (1.0 - self.momentum))
            self.running_var = (self.running_var * self.momentum
                                + var * (1.0 - self.momentum))
            return out
        # eval: normalize with running statistics via the same folded-affine kernels
        a = self.weight * jax.lax.rsqrt(self.running_var + self.eps)
        c = self.bias - self.running_mean * a
        C = self.num_features
        if X.ndim == 4:
            return _apply_affine_4d(X, a.reshape(C, 1), c.reshape(C, 1))
        return _apply_affine_2d(X, a.reshape(1, C), c.reshape(1, C))


if __name__ == "__main__":
    key = jax.random.PRNGKey(0)
    k_param, k_x4, k_x2, k_x4b, k_x2b = jax.random.split(key, 5)

    B, C, H, W = 2, 4, 16, 16
    bn = BatchNormPallas(num_features=C, training=True, key=k_param)

    def ref4d(x, w, b, eps):
        m = jnp.mean(x, axis=(0, 2, 3))
        v = jnp.mean((x - m.reshape(1, -1, 1, 1)) ** 2, axis=(0, 2, 3))
        xn = (x - m.reshape(1, -1, 1, 1)) / jnp.sqrt(v.reshape(1, -1, 1, 1) + eps)
        return w.reshape(1, -1, 1, 1) * xn + b.reshape(1, -1, 1, 1), m, v

    # ---- 4D NCHW, training (fused single-pass path) ----
    x4 = jax.random.normal(k_x4, (B, C, H, W), dtype=jnp.float32)
    out4 = jax.block_until_ready(bn(x4))
    ref4, mean_ref, var_ref = ref4d(x4, bn.weight, bn.bias, bn.eps)
    assert jnp.allclose(out4, ref4, atol=1e-4, rtol=1e-4), "4D fused path mismatch"

    # ---- 4D NCHW, tiled two-pass path (exercised explicitly) ----
    out4b, m4b, v4b = _bn_train_4d_two_pass(x4, bn.weight, bn.bias, bn.eps)
    out4b = jax.block_until_ready(out4b)
    assert jnp.allclose(out4b, ref4, atol=1e-4, rtol=1e-4), "4D two-pass path mismatch"
    assert jnp.allclose(m4b, mean_ref, atol=1e-5, rtol=1e-5)
    assert jnp.allclose(v4b, var_ref, atol=1e-5, rtol=1e-5)

    # ---- 4D two-pass with a padded (masked) last reduction tile ----
    x4c = jax.random.normal(k_x4b, (1, 8, 64, 80), dtype=jnp.float32)  # HW=5120 > 4096
    out4c, m4c, v4c = _bn_train_4d_two_pass(x4c, jnp.ones((8,)), jnp.zeros((8,)), bn.eps)
    out4c = jax.block_until_ready(out4c)
    ref4c, m4c_ref, v4c_ref = ref4d(x4c, jnp.ones((8,)), jnp.zeros((8,)), bn.eps)
    assert jnp.allclose(out4c, ref4c, atol=1e-4, rtol=1e-4), "4D masked-edge mismatch"
    assert jnp.allclose(m4c, m4c_ref, atol=1e-5, rtol=1e-5)
    assert jnp.allclose(v4c, v4c_ref, atol=1e-5, rtol=1e-5)

    # ---- 2D (N, C), training (fused single-pass path) ----
    x2 = jax.random.normal(k_x2, (8, C), dtype=jnp.float32)
    out2 = jax.block_until_ready(bn(x2))
    m2 = jnp.mean(x2, axis=0)
    v2 = jnp.mean((x2 - m2) ** 2, axis=0)
    ref2 = bn.weight * ((x2 - m2) / jnp.sqrt(v2 + bn.eps)) + bn.bias
    assert jnp.allclose(out2, ref2, atol=1e-4, rtol=1e-4), "2D fused path mismatch"

    # ---- 2D two-pass path with a padded (masked) last reduction tile ----
    x2b = jax.random.normal(k_x2b, (300, C), dtype=jnp.float32)  # N=300 > 256
    out2b, m2b, v2b = _bn_train_2d_two_pass(x2b, bn.weight, bn.bias, bn.eps)
    out2b = jax.block_until_ready(out2b)
    m2b_ref = jnp.mean(x2b, axis=0)
    v2b_ref = jnp.mean((x2b - m2b_ref) ** 2, axis=0)
    ref2b = bn.weight * ((x2b - m2b_ref) / jnp.sqrt(v2b_ref + bn.eps)) + bn.bias
    assert jnp.allclose(out2b, ref2b, atol=1e-4, rtol=1e-4), "2D two-pass path mismatch"
    assert jnp.allclose(m2b, m2b_ref, atol=1e-5, rtol=1e-5)
    assert jnp.allclose(v2b, v2b_ref, atol=1e-5, rtol=1e-5)

    # ---- eval paths (running stats, folded-affine kernels) ----
    bn.training = False
    out4e = jax.block_until_ready(bn(x4))
    ref4e = (bn.weight.reshape(1, C, 1, 1)
             * (x4 - bn.running_mean.reshape(1, C, 1, 1))
             / jnp.sqrt(bn.running_var.reshape(1, C, 1, 1) + bn.eps)
             + bn.bias.reshape(1, C, 1, 1))
    assert jnp.allclose(out4e, ref4e, atol=1e-4, rtol=1e-4), "4D eval path mismatch"

    out2e = jax.block_until_ready(bn(x2))
    ref2e = (bn.weight * (x2 - bn.running_mean)
             / jnp.sqrt(bn.running_var + bn.eps) + bn.bias)
    assert jnp.allclose(out2e, ref2e, atol=1e-4, rtol=1e-4), "2D eval path mismatch"

    print("KERNEL_OK")
</pallas_src>

<mosaic_0001>
module attributes {stable_mosaic.version = 11 : i64} {
  func.func @_fused4d_kernel(%arg0: i32, %arg1: memref<2x4x256xf32, #tpu.memory_space<vmem>>, %arg2: memref<4x1xf32, #tpu.memory_space<vmem>>, %arg3: memref<4x1xf32, #tpu.memory_space<vmem>>, %arg4: memref<2x4x256xf32, #tpu.memory_space<vmem>>, %arg5: memref<4x1xf32, #tpu.memory_space<vmem>>, %arg6: memref<4x1xf32, #tpu.memory_space<vmem>>) attributes {dimension_semantics = [#tpu.dimension_semantics<parallel>], iteration_bounds = array<i64: 1>, scalar_prefetch = 0 : i64, scratch_operands = 0 : i64, tpu.core_type = #tpu.core_type<tc>, window_params = [{transform_indices = @transform_0, window_bounds = array<i64: 2, 4, 256>}, {transform_indices = @transform_1, window_bounds = array<i64: 4, 1>}, {transform_indices = @transform_2, window_bounds = array<i64: 4, 1>}, {transform_indices = @transform_3, window_bounds = array<i64: 2, 4, 256>}, {transform_indices = @transform_4, window_bounds = array<i64: 4, 1>}, {transform_indices = @transform_5, window_bounds = array<i64: 4, 1>}]} {
    %c0 = arith.constant 0 : index
    %c0_0 = arith.constant 0 : index
    %c0_1 = arith.constant 0 : index
    %0 = vector.load %arg1[%c0, %c0_0, %c0_1] : memref<2x4x256xf32, #tpu.memory_space<vmem>>, vector<2x4x256xf32>
    %cst = arith.constant dense<0.000000e+00> : vector<2x4xf32>
    %1 = vector.multi_reduction <add>, %0, %cst [2] : vector<2x4x256xf32> to vector<2x4xf32>
    %2 = vector.shape_cast %1 : vector<2x4xf32> to vector<2x4x1xf32>
    %cst_2 = arith.constant dense<0.000000e+00> : vector<4x1xf32>
    %3 = vector.multi_reduction <add>, %2, %cst_2 [0] : vector<2x4x1xf32> to vector<4x1xf32>
    %4 = arith.mulf %0, %0 : vector<2x4x256xf32>
    %cst_3 = arith.constant dense<0.000000e+00> : vector<2x4xf32>
    %5 = vector.multi_reduction <add>, %4, %cst_3 [2] : vector<2x4x256xf32> to vector<2x4xf32>
    %6 = vector.shape_cast %5 : vector<2x4xf32> to vector<2x4x1xf32>
    %cst_4 = arith.constant dense<0.000000e+00> : vector<4x1xf32>
    %7 = vector.multi_reduction <add>, %6, %cst_4 [0] : vector<2x4x1xf32> to vector<4x1xf32>
    %cst_5 = arith.constant 0.001953125 : f32
    %8 = vector.broadcast %cst_5 : f32 to vector<4x1xf32>
    %9 = arith.mulf %3, %8 : vector<4x1xf32>
    %cst_6 = arith.constant 0.001953125 : f32
    %10 = vector.broadcast %cst_6 : f32 to vector<4x1xf32>
    %11 = arith.mulf %7, %10 : vector<4x1xf32>
    %12 = arith.mulf %9, %9 : vector<4x1xf32>
    %13 = arith.subf %11, %12 : vector<4x1xf32>
    %cst_7 = arith.constant 0.000000e+00 : f32
    %14 = vector.broadcast %cst_7 : f32 to vector<4x1xf32>
    %15 = arith.maximumf %13, %14 : vector<4x1xf32>
    %c0_8 = arith.constant 0 : index
    %c0_9 = arith.constant 0 : index
    %16 = vector.load %arg2[%c0_8, %c0_9] : memref<4x1xf32, #tpu.memory_space<vmem>>, vector<4x1xf32>
    %cst_10 = arith.constant 9.99999974E-6 : f32
    %17 = vector.broadcast %cst_10 : f32 to vector<4x1xf32>
    %18 = arith.addf %15, %17 : vector<4x1xf32>
    %19 = math.rsqrt %18 : vector<4x1xf32>
    %20 = arith.mulf %16, %19 : vector<4x1xf32>
    %c0_11 = arith.constant 0 : index
    %c0_12 = arith.constant 0 : index
    %21 = vector.load %arg3[%c0_11, %c0_12] : memref<4x1xf32, #tpu.memory_space<vmem>>, vector<4x1xf32>
    %22 = arith.mulf %9, %20 : vector<4x1xf32>
    %23 = arith.subf %21, %22 : vector<4x1xf32>
    %24 = vector.shape_cast %20 : vector<4x1xf32> to vector<1x4x1xf32>
    %25 = vector.broadcast %24 : vector<1x4x1xf32> to vector<2x4x256xf32>
    %26 = arith.mulf %0, %25 : vector<2x4x256xf32>
    %27 = vector.shape_cast %23 : vector<4x1xf32> to vector<1x4x1xf32>
    %28 = vector.broadcast %27 : vector<1x4x1xf32> to vector<2x4x256xf32>
    %29 = arith.addf %26, %28 : vector<2x4x256xf32>
    %c0_13 = arith.constant 0 : index
    %c0_14 = arith.constant 0 : index
    %c0_15 = arith.constant 0 : index
    %30 = vector.load %arg4[%c0_13, %c0_14, %c0_15] : memref<2x4x256xf32, #tpu.memory_space<vmem>>, vector<2x4x256xf32>
    tpu.vector_store %arg4[%c0_13, %c0_14, %c0_15], %29 {strides = array<i32>} : memref<2x4x256xf32, #tpu.memory_space<vmem>>, vector<2x4x256xf32>,
    %c0_16 = arith.constant 0 : index
    %c0_17 = arith.constant 0 : index
    %31 = vector.load %arg5[%c0_16, %c0_17] : memref<4x1xf32, #tpu.memory_space<vmem>>, vector<4x1xf32>
    tpu.vector_store %arg5[%c0_16, %c0_17], %9 {strides = array<i32>} : memref<4x1xf32, #tpu.memory_space<vmem>>, vector<4x1xf32>,
    %c0_18 = arith.constant 0 : index
    %c0_19 = arith.constant 0 : index
    %32 = vector.load %arg6[%c0_18, %c0_19] : memref<4x1xf32, #tpu.memory_space<vmem>>, vector<4x1xf32>
    tpu.vector_store %arg6[%c0_18, %c0_19], %15 {strides = array<i32>} : memref<4x1xf32, #tpu.memory_space<vmem>>, vector<4x1xf32>,
    return
  }
  func.func @transform_0(%arg0: i32) -> (i32, i32, i32) {
    %c0_i32 = arith.constant 0 : i32
    %c0_i32_0 = arith.constant 0 : i32
    %c0_i32_1 = arith.constant 0 : i32
    return %c0_i32, %arg0, %c0_i32_0 : i32, i32, i32
  }
  func.func @transform_1(%arg0: i32) -> (i32, i32) {
    %c0_i32 = arith.constant 0 : i32
    %c0_i32_0 = arith.constant 0 : i32
    return %arg0, %c0_i32 : i32, i32
  }
  func.func @transform_2(%arg0: i32) -> (i32, i32) {
    %c0_i32 = arith.constant 0 : i32
    %c0_i32_0 = arith.constant 0 : i32
    return %arg0, %c0_i32 : i32, i32
  }
  func.func @transform_3(%arg0: i32) -> (i32, i32, i32) {
    %c0_i32 = arith.constant 0 : i32
    %c0_i32_0 = arith.constant 0 : i32
    %c0_i32_1 = arith.constant 0 : i32
    return %c0_i32, %arg0, %c0_i32_0 : i32, i32, i32
  }
  func.func @transform_4(%arg0: i32) -> (i32, i32) {
    %c0_i32 = arith.constant 0 : i32
    %c0_i32_0 = arith.constant 0 : i32
    return %arg0, %c0_i32 : i32, i32
  }
  func.func @transform_5(%arg0: i32) -> (i32, i32) {
    %c0_i32 = arith.constant 0 : i32
    %c0_i32_0 = arith.constant 0 : i32
    return %arg0, %c0_i32 : i32, i32
  }
}

</mosaic_0001>

<bundles_post_ra>
// kernel: tpu_custom_call.1
= control target key start
LH: loop header
LB: loop body
LE: loop exit
PB: predicated region body
PF: predicated region fallthrough
CT: control target
= control target key end

     0   :  { %11 = vsyncpa [#allocation3], 0  ;;  %s311_s0 = inlined_call_operand.hbm [shape: f32[2,4,256], index: 0, kind: input, shape index: {}]   ;;  %s312_s1 = inlined_call_operand.vmem [shape: f32[4,1], index: 1, kind: input, shape index: {}]   ;;  %s313_s2 = inlined_call_operand.vmem [shape: f32[4,1], index: 2, kind: input, shape index: {}]   ;;  %s314_s3 = inlined_call_operand.hbm [shape: f32[2,4,256], index: 3, kind: output, shape index: {0}]   ;;  %s315_s4 = inlined_call_operand.vmem [shape: f32[4,1], index: 4, kind: output, shape index: {1}]   ;;  %s316_s5 = inlined_call_operand.vmem [shape: f32[4,1], index: 5, kind: output, shape index: {2}]  }
   0x1   :  { %12 = vsyncpa [#allocation4], 0  ;;  %s205_s18 = smov [#allocation2]   ;;  %s157_s22 = scalar_lea.hbm %s311_s0, 256 }
   0x2   :  { %s18_s19 = sshll.u32 %s205_s18, 4  ;;  %p158_p0 = scmp.ne.s32.totalorder %s311_s0, %s157_s22  ;;  %s19_s19 = int_to_ptr.vmem [resolvable:$true] %s18_s19 }
   0x3   :  { %p161_p1 = scmp.lt.u32.totalorder %s157_s22, %s311_s0 }
   0x5   :  { %p163_p2 = pnand %p161_p1, %p158_p0 }
   0x7   :  { %166 = shalt.err (!%p163_p2)
}
   0x8   :  { %s167_s27 = scalar_lea.vmem %s19_s19, 256  ;;  %p172_p4 = scmp.lt.s32.totalorder %s19_s19, %s19_s19 }
   0x9   :  { %p168_p3 = scmp.ne.s32.totalorder %s19_s19, %s167_s27  ;;  %p173_p5 = scmp.lt.s32.totalorder %s167_s27, %s167_s27 }
   0xb   :  { %p174_p6 = por %p173_p5, %p172_p4 }
   0xd   :  { %p175_p7 = pnand %p174_p6, %p168_p3 }
   0xf   :  { %178 = shalt.err (!%p175_p7)
}
  0x10   :  { %s206_s28 = smov 128   ;;  %s207_s29 = smov 8  }
  0x11   :  { %24 = dma.hbm_to_vmem [thread:$0]  %s311_s0, 256, %s19_s19, [#allocation3], %s206_s28, %s206_s28, %s207_s29  }
  0x12   :  { %201 = dma.done.wait [#allocation3], 256  }
  0x13   :  { %202 = vsyncadd [#allocation3], 4294967040  ;;  %vm40_vm0 = vcmask 1043456   ;;  %v256_v0 = vld [vmem:[#allocation2] sm:$0xff]  ;;  %v258_v1 = vld [vmem:[#allocation2 + $0x8] sm:$0xff]  ;;  %v208_v20 = vmov 0   ;;  %v94_v45 = vlaneseq }
  0x14   :  { %v36_v2 = vcombine.high %v256_v0, %v256_v0  ;;  %v41_v3 = vsel %vm40_vm0, %v256_v0, 0.0  ;;  %v54_v4 = vmul.f32 %v256_v0, %v256_v0  ;;  %v37_v5 = vcombine.high %v258_v1, %v258_v1  ;;  %151 = vset.pattern.permute.xlu0 %v208_v20  ;;  %152 = vset.pattern.permute.xlu1 %v208_v20  ;;  %v80_v37 = vld [vmem:[%s312_s1] sm:$0xf]  ;;  %s210_s1 = smov [#allocation5]  }
  0x15   :  { %v46_v6 = vsel %vm40_vm0, %v258_v1, 0.0  ;;  %v55_v7 = vmul.f32 %v258_v1, %v258_v1  ;;  %vm117_vm1 = vcmask 3072   ;;  %v84_v40 = vld [vmem:[%s313_s2] sm:$0xf]  ;;  %v209_v43 = vmov 839922192  }
  0x16   :  { %v42_v8 = vsel %vm40_vm0, %v36_v2, 0.0  ;;  %v58_v9 = vcombine.high %v54_v4, %v54_v4  ;;  %v62_v10 = vsel %vm40_vm0, %v54_v4, 0.0  ;;  %v47_v11 = vsel %vm40_vm0, %v37_v5, 0.0 }
  0x17   :  { %v43_v12 = vadd.f32 %v42_v8, %v41_v3  ;;  %v59_v13 = vcombine.high %v55_v7, %v55_v7  ;;  %v67_v15 = vsel %vm40_vm0, %v55_v7, 0.0  ;;  %v48_v17 = vadd.f32 %v47_v11, %v46_v6 }
  0x18   :  { %v63_v14 = vsel %vm40_vm0, %v58_v9, 0.0  ;;  %v92_v44 = vunpack.c.l.s4 %v209_v43  ;;  %v95_v47 = vshrl.u32 %v94_v45, 7 }
  0x19   :  { %44 = vadd.xlane.f32.xlu0 %v43_v12  ;;  %v64_v16 = vadd.f32 %v63_v14, %v62_v10  ;;  %v68_v18 = vsel %vm40_vm0, %v59_v13, 0.0 }
  0x1a   :  { %v69_v19 = vadd.f32 %v68_v18, %v67_v15  ;;  %v93_v46 = vunpack.c.0.s8 %v92_v44 }
  0x1b   :  { %65 = vadd.xlane.f32.xlu1 %v64_v16 }
  0x1c   :  { %v96_v48 = vsub.s32 %v93_v46, %v95_v47 }
  0x1d   :  { %49 = vadd.xlane.f32.xlu0 %v48_v17 }
  0x1f   :  { %70 = vadd.xlane.f32.xlu1 %v69_v19 }
  0xa6   :  { %v45_v21 = vpop.xlane.xlu0 %44 }
  0xa7   :  { %v51_v24 = vsel %vm40_vm0, %v45_v21, 0.0 }
  0xa8   :  { %v66_v22 = vpop.xlane.xlu1 %65 }
  0xa9   :  { %v72_v28 = vsel %vm40_vm0, %v66_v22, 0.0 }
  0xaa   :  { %v50_v23 = vpop.xlane.xlu0 %49 }
  0xab   :  { %v52_v25 = vsel %vm40_vm0, %v50_v23, 0.0 }
  0xac   :  { %v53_v26 = vadd.f32 %v52_v25, %v51_v24  ;;  %v71_v27 = vpop.xlane.xlu1 %70 }
  0xad   :  { %v73_v29 = vsel %vm40_vm0, %v71_v27, 0.0 }
  0xae   :  { %v75_v30 = vmul.f32 0.001953125, %v53_v26  ;;  %v74_v31 = vadd.f32 %v73_v29, %v72_v28 }
  0xb0   :  { %118 = vst.msk [vmem:[%s315_s4] sm:$0xf] %vm117_vm1, %v75_v30  ;;  %v76_v32 = vmul.f32 0.001953125, %v74_v31  ;;  %v77_v33 = vmul.f32 %v75_v30, %v75_v30  ;;  %s125_s4 = sshll.u32 %s210_s1, 4  ;;  %s126_s4 = int_to_ptr.vmem [resolvable:$true] %s125_s4 }
  0xb1   :  { %s179_s2 = scalar_lea.vmem %s126_s4, 256  ;;  %p184_p9 = scmp.lt.s32.totalorder %s126_s4, %s126_s4 }
  0xb2   :  { %v78_v34 = vsub.f32 %v76_v32, %v77_v33  ;;  %p180_p8 = scmp.ne.s32.totalorder %s126_s4, %s179_s2  ;;  %p185_p10 = scmp.lt.s32.totalorder %s179_s2, %s179_s2 }
  0xb4   :  { %v79_v35 = vmax.f32 %v78_v34, 0.0  ;;  %p186_p11 = por %p185_p10, %p184_p9 }
  0xb6   :  { %v81_v36 = vadd.f32 1e-05, %v79_v35  ;;  %119 = vst.msk [vmem:[%s316_s5] sm:$0xf] %vm117_vm1, %v79_v35  ;;  %p187_p12 = pnand %p186_p11, %p180_p8 }
  0xb8   :  { %155 = vrsqrt.f32 %v81_v36 }
  0xc2   :  { %v156_v38 = vpop.eup %155 }
  0xc3   :  { %v83_v39 = vmul.f32 %v156_v38, %v80_v37 }
  0xc5   :  { %89 = vperm.xlu0 %151, %v83_v39   ;;  %v85_v41 = vmul.f32 %v83_v39, %v75_v30 }
  0xc7   :  { %v86_v42 = vsub.f32 %v84_v40, %v85_v41 }
  0xc9   :  { %103 = vperm.xlu1 %152, %v86_v42  }
 0x144   :  { %v90_v49 = vpop.permute.xlu0 %89 }
 0x145   :  { %v97_v50 = vrot.slane %v90_v49, %v96_v48 }
 0x147   :  { %v99_v52 = vmul.f32 %v97_v50, %v256_v0  ;;  %v100_v53 = vmul.f32 %v97_v50, %v258_v1 }
 0x148   :  { %v104_v51 = vpop.permute.xlu1 %103 }
 0x149   :  { %v111_v54 = vrot.slane %v104_v51, %v96_v48 }
 0x14b   :  { %v113_v55 = vadd.f32 %v111_v54, %v99_v52  ;;  %v114_v56 = vadd.f32 %v111_v54, %v100_v53 }
 0x14d   :  { %115 = vst [vmem:[#allocation5] sm:$0xff] %v113_v55  ;;  %116 = vst [vmem:[#allocation5 + $0x8] sm:$0xff] %v114_v56 }
 0x14e   :  { %190 = shalt.err (!%p187_p12)
}
 0x14f   :  { %s191_s15 = scalar_lea.hbm %s314_s3, 256 }
 0x150   :  { %p192_p13 = scmp.ne.s32.totalorder %s314_s3, %s191_s15  ;;  %p195_p0 = scmp.lt.u32.totalorder %s191_s15, %s314_s3 }
 0x152   :  { %p197_p1 = pnand %p195_p0, %p192_p13 }
 0x154   :  { %200 = shalt.err (!%p197_p1)
}
 0x155   :  { %131 = dma.vmem_to_hbm [thread:$0]  %s126_s4, 256, %s314_s3, [#allocation4], %s206_s28, %s206_s28, %s207_s29  }
 0x156   :  { %203 = dma.done.wait [#allocation4], 256  }
 0x157   :  { %204 = vsyncadd [#allocation4], 4294967040 }
 0x158   :  { %143 = vsyncpa [#allocation3], 1 }
 0x159   :  { %144 = vsyncpa [#allocation4], 1 }

</bundles_post_ra>
